<compile_context>
chip_gen: v5e
topology: v5e:2x2
jax: 0.10.0
libtpu: 0.0.40
codegen_flags: <defaults>
</compile_context>

<pallas_src>
import functools

import jax
import jax.numpy as jnp
from jax.experimental import pallas as pl
from jax.experimental.pallas import tpu as pltpu


def _round_up(x, m):
    return ((x + m - 1) // m) * m


def _pick_ff_chunk(d_ff, target):
    """Largest multiple-of-128 divisor of d_ff not exceeding `target`
    (falls back to fully-resident d_ff if none exists)."""
    if d_ff <= target:
        return d_ff
    best = None
    c = 128
    while c <= target:
        if d_ff % c == 0:
            best = c
        c += 128
    return best if best is not None else d_ff


def _ffn_kernel(x_ref, w1_ref, b1_ref, w2_ref, b2_ref, o_ref, acc_ref):
    # x_ref : (TM, d_model) f32     w1_ref: (d_model, TFF) bf16   b1_ref: (1, TFF) f32
    # w2_ref: (TFF, d_model) bf16   b2_ref: (1, d_model) f32
    # o_ref : (TM, d_model)         acc_ref: (TM, d_model) f32 scratch
    k = pl.program_id(1)

    @pl.when(k == 0)
    def _():
        acc_ref[...] = jnp.zeros_like(acc_ref)

    # First matmul: bf16 operands on the MXU, f32 accumulation.
    h = jnp.dot(x_ref[...].astype(jnp.bfloat16), w1_ref[...],
                preferred_element_type=jnp.float32)
    # Bias add + ReLU in f32 on the VPU (v5e has no bf16 VPU).
    h = jnp.maximum(h + b1_ref[...], 0.0)
    # Dropout == identity in eval mode.
    # Second matmul: bf16 operands, accumulate f32 into the resident scratch.
    acc_ref[...] += jnp.dot(h.astype(jnp.bfloat16), w2_ref[...],
                            preferred_element_type=jnp.float32)

    @pl.when(k == pl.num_programs(1) - 1)
    def _():
        o_ref[...] = (acc_ref[...] + b2_ref[...]).astype(o_ref.dtype)


def prepare_ffn_params(w1, b1, w2, b2):
    """One-time parameter prep (hoisted out of the per-call path):
    lane-major bf16 weights for the MXU, lane-dense f32 bias rows."""
    d_ff, d_model = w1.shape
    assert w2.shape == (d_model, d_ff) and b1.shape == (d_ff,) and b2.shape == (d_model,)
    w1_t = w1.T.astype(jnp.bfloat16)                 # (d_model, d_ff)
    w2_t = w2.T.astype(jnp.bfloat16)                 # (d_ff, d_model)
    b1_r = b1.reshape(1, d_ff).astype(jnp.float32)   # lane-dense bias rows
    b2_r = b2.reshape(1, d_model).astype(jnp.float32)
    return w1_t, b1_r, w2_t, b2_r


@functools.partial(jax.jit, static_argnames=("block_tokens", "ff_chunk"))
def positionwise_ffn_prepared(x, w1_t, b1_r, w2_t, b2_r, *,
                              block_tokens=256, ff_chunk=1024):
    """Fused FFN forward with pre-transposed / pre-cast parameters.

    x   : (..., d_model)
    w1_t: (d_model, d_ff) bf16, b1_r: (1, d_ff) f32
    w2_t: (d_ff, d_model) bf16, b2_r: (1, d_model) f32
    """
    orig_shape = x.shape
    d_model, d_ff = w1_t.shape

    # Flatten leading dims into a token axis (the FFN is position-wise).
    xt = x.reshape(-1, d_model)
    n = xt.shape[0]

    # Token tile: multiple of 8 sublanes. For small n, shrink so the "parallel"
    # grid axis has >= 2 steps (keeps both v7x TensorCores busy).
    tm = max(8, _round_up(min(block_tokens, n), 8))
    if pl.cdiv(n, tm) < 2 and n > 8:
        tm = max(8, _round_up(pl.cdiv(n, 2), 8))
    n_tok_tiles = pl.cdiv(n, tm)      # partial last block handled by masked writeback

    # Stream d_ff in chunks: VMEM use is O(tff), not O(d_ff).
    tff = _pick_ff_chunk(d_ff, ff_chunk)
    n_ff_chunks = d_ff // tff

    # VMEM budget: double-buffered tiles + f32 accumulator, with headroom,
    # capped comfortably under v7x's 64 MiB physical VMEM.
    tile_bytes = (
        2 * (tm * d_model * 4)        # x tile (f32)
        + 2 * (d_model * tff * 2)     # W1^T chunk (bf16)
        + 2 * (8 * tff * 4)           # b1 row (f32, sublane-padded)
        + 2 * (tff * d_model * 2)     # W2^T chunk (bf16)
        + 2 * (8 * d_model * 4)       # b2 row (f32)
        + 2 * (tm * d_model * 4)      # out tile (f32)
        + tm * d_model * 4)           # acc scratch (f32)
    vmem_limit = int(min(max(2 * tile_bytes, 32 * 1024 * 1024), 56 * 1024 * 1024))

    flops = 4 * n * d_model * d_ff                      # two matmuls
    bytes_accessed = int(xt.size * 4 + n * d_model * 4
                         + n_tok_tiles * (w1_t.size + w2_t.size) * 2
                         + (b1_r.size + b2_r.size) * 4)

    out = pl.pallas_call(
        _ffn_kernel,
        out_shape=jax.ShapeDtypeStruct((n, d_model), x.dtype),
        grid_spec=pltpu.PrefetchScalarGridSpec(
            num_scalar_prefetch=0,
            grid=(n_tok_tiles, n_ff_chunks),
            in_specs=[
                pl.BlockSpec((tm, d_model), lambda i, k: (i, 0)),    # x tile (resident over k)
                pl.BlockSpec((d_model, tff), lambda i, k: (0, k)),   # W1^T chunk
                pl.BlockSpec((1, tff), lambda i, k: (0, k)),         # b1 chunk
                pl.BlockSpec((tff, d_model), lambda i, k: (k, 0)),   # W2^T chunk
                pl.BlockSpec((1, d_model), lambda i, k: (0, 0)),     # b2
            ],
            out_specs=pl.BlockSpec((tm, d_model), lambda i, k: (i, 0)),
            scratch_shapes=[pltpu.VMEM((tm, d_model), jnp.float32)],
        ),
        compiler_params=pltpu.CompilerParams(
            dimension_semantics=("parallel", "arbitrary"),
            vmem_limit_bytes=vmem_limit),
        cost_estimate=pl.CostEstimate(flops=flops, transcendentals=0,
                                      bytes_accessed=bytes_accessed),
    )(xt, w1_t, b1_r, w2_t, b2_r)

    return out.reshape(orig_shape)


def positionwise_ffn(x, w1, b1, w2, b2, *, block_tokens=256, ff_chunk=1024):
    """Convenience wrapper taking PyTorch-convention weights (prep done per call;
    prefer prepare_ffn_params + positionwise_ffn_prepared to hoist it)."""
    w1_t, b1_r, w2_t, b2_r = prepare_ffn_params(w1, b1, w2, b2)
    return positionwise_ffn_prepared(x, w1_t, b1_r, w2_t, b2_r,
                                     block_tokens=block_tokens, ff_chunk=ff_chunk)


def reference_ffn(x, w1, b1, w2, b2):
    h = jnp.maximum(x @ w1.T + b1, 0.0)
    return h @ w2.T + b2


if __name__ == "__main__":
    # Small shapes consistent with the module: batch=2, seq=8,
    # d_model=128, d_ff=256 (lane-aligned feature dims).
    B, S, d_model, d_ff = 2, 8, 128, 256
    key = jax.random.PRNGKey(0)
    kx, kw1, kb1, kw2, kb2 = jax.random.split(key, 5)

    x = jax.random.normal(kx, (B, S, d_model), dtype=jnp.float32)

    # PyTorch-Linear-like uniform init.
    bound1 = 1.0 / (d_model ** 0.5)
    w1 = jax.random.uniform(kw1, (d_ff, d_model), jnp.float32, -bound1, bound1)
    b1 = jax.random.uniform(kb1, (d_ff,), jnp.float32, -bound1, bound1)
    bound2 = 1.0 / (d_ff ** 0.5)
    w2 = jax.random.uniform(kw2, (d_model, d_ff), jnp.float32, -bound2, bound2)
    b2 = jax.random.uniform(kb2, (d_model,), jnp.float32, -bound2, bound2)

    # One-time parameter prep (hoisted out of the per-call path).
    w1_t, b1_r, w2_t, b2_r = prepare_ffn_params(w1, b1, w2, b2)

    out = positionwise_ffn_prepared(x, w1_t, b1_r, w2_t, b2_r)
    out = jax.block_until_ready(out)

    ref = reference_ffn(x, w1, b1, w2, b2)
    assert out.shape == (B, S, d_model)
    # bf16 MXU path -> slightly looser tolerance than pure f32.
    assert jnp.allclose(out, ref, atol=5e-2, rtol=5e-2), float(jnp.max(jnp.abs(out - ref)))

    # Also exercise a token count that is not a multiple of the row tile
    # (partial last block, no wrapper-side padding/slicing).
    x2 = jax.random.normal(kx, (3, 7, d_model), dtype=jnp.float32)
    out2 = jax.block_until_ready(
        positionwise_ffn_prepared(x2, w1_t, b1_r, w2_t, b2_r, block_tokens=16))
    ref2 = reference_ffn(x2, w1, b1, w2, b2)
    assert out2.shape == (3, 7, d_model)
    assert jnp.allclose(out2, ref2, atol=5e-2, rtol=5e-2), float(jnp.max(jnp.abs(out2 - ref2)))

    print("KERNEL_OK")
</pallas_src>

<mosaic_0001>
module attributes {stable_mosaic.version = 11 : i64} {
  func.func @_ffn_kernel(%arg0: i32, %arg1: i32, %arg2: memref<8x128xf32, #tpu.memory_space<vmem>>, %arg3: memref<128x256xbf16, #tpu.memory_space<vmem>>, %arg4: memref<1x256xf32, #tpu.memory_space<vmem>>, %arg5: memref<256x128xbf16, #tpu.memory_space<vmem>>, %arg6: memref<1x128xf32, #tpu.memory_space<vmem>>, %arg7: memref<8x128xf32, #tpu.memory_space<vmem>>, %arg8: memref<8x128xf32, #tpu.memory_space<vmem>>) attributes {dimension_semantics = [#tpu.dimension_semantics<parallel>, #tpu.dimension_semantics<arbitrary>], iteration_bounds = array<i64: 2, 1>, scalar_prefetch = 0 : i64, scratch_operands = 1 : i64, tpu.core_type = #tpu.core_type<tc>, window_params = [{transform_indices = @transform_0, window_bounds = array<i64: 8, 128>}, {transform_indices = @transform_1, window_bounds = array<i64: 128, 256>}, {transform_indices = @transform_2, window_bounds = array<i64: 1, 256>}, {transform_indices = @transform_3, window_bounds = array<i64: 256, 128>}, {pipeline_mode = #tpu.pipeline_mode<synchronous>, transform_indices = @transform_4, window_bounds = array<i64: 1, 128>}, {transform_indices = @transform_5, window_bounds = array<i64: 8, 128>}]} {
    %c0_i32 = arith.constant 0 : i32
    %0 = arith.cmpi eq, %arg1, %c0_i32 : i32
    %1 = arith.extui %0 : i1 to i32
    %c0_i32_0 = arith.constant 0 : i32
    %2 = arith.cmpi ne, %1, %c0_i32_0 : i32
    scf.if %2 {
      %cst_16 = arith.constant 0.000000e+00 : f32
      %21 = vector.broadcast %cst_16 : f32 to vector<8x128xf32>
      %c0_17 = arith.constant 0 : index
      %c0_18 = arith.constant 0 : index
      %22 = vector.load %arg8[%c0_17, %c0_18] : memref<8x128xf32, #tpu.memory_space<vmem>>, vector<8x128xf32>
      tpu.vector_store %arg8[%c0_17, %c0_18], %21 {strides = array<i32>} : memref<8x128xf32, #tpu.memory_space<vmem>>, vector<8x128xf32>,
    } else {
    }
    %c0 = arith.constant 0 : index
    %c0_1 = arith.constant 0 : index
    %3 = vector.load %arg2[%c0, %c0_1] : memref<8x128xf32, #tpu.memory_space<vmem>>, vector<8x128xf32>
    %4 = arith.truncf %3 : vector<8x128xf32> to vector<8x128xbf16>
    %c0_2 = arith.constant 0 : index
    %c0_3 = arith.constant 0 : index
    %5 = vector.load %arg3[%c0_2, %c0_3] : memref<128x256xbf16, #tpu.memory_space<vmem>>, vector<128x256xbf16>
    %cst = arith.constant dense<0.000000e+00> : vector<8x256xf32>
    %6 = tpu.matmul %4, %5, %cst {dimension_numbers = #tpu.dot_dimension_numbers<[1], [0], [0], [1], [0, 0, 1, 1], [], []>} : vector<8x128xbf16>, vector<128x256xbf16>, vector<8x256xf32> -> vector<8x256xf32>
    %c0_4 = arith.constant 0 : index
    %c0_5 = arith.constant 0 : index
    %7 = vector.load %arg4[%c0_4, %c0_5] : memref<1x256xf32, #tpu.memory_space<vmem>>, vector<1x256xf32>
    %8 = vector.broadcast %7 : vector<1x256xf32> to vector<8x256xf32>
    %9 = arith.addf %6, %8 : vector<8x256xf32>
    %cst_6 = arith.constant 0.000000e+00 : f32
    %10 = vector.broadcast %cst_6 : f32 to vector<8x256xf32>
    %11 = arith.maximumf %9, %10 : vector<8x256xf32>
    %c0_7 = arith.constant 0 : index
    %c0_8 = arith.constant 0 : index
    %12 = vector.load %arg8[%c0_7, %c0_8] : memref<8x128xf32, #tpu.memory_space<vmem>>, vector<8x128xf32>
    %13 = arith.truncf %11 : vector<8x256xf32> to vector<8x256xbf16>
    %c0_9 = arith.constant 0 : index
    %c0_10 = arith.constant 0 : index
    %14 = vector.load %arg5[%c0_9, %c0_10] : memref<256x128xbf16, #tpu.memory_space<vmem>>, vector<256x128xbf16>
    %cst_11 = arith.constant dense<0.000000e+00> : vector<8x128xf32>
    %15 = tpu.matmul %13, %14, %cst_11 {dimension_numbers = #tpu.dot_dimension_numbers<[1], [0], [0], [1], [0, 0, 1, 1], [], []>} : vector<8x256xbf16>, vector<256x128xbf16>, vector<8x128xf32> -> vector<8x128xf32>
    %16 = arith.addf %12, %15 : vector<8x128xf32>
    %c0_12 = arith.constant 0 : index
    %c0_13 = arith.constant 0 : index
    %17 = vector.load %arg8[%c0_12, %c0_13] : memref<8x128xf32, #tpu.memory_space<vmem>>, vector<8x128xf32>
    tpu.vector_store %arg8[%c0_12, %c0_13], %16 {strides = array<i32>} : memref<8x128xf32, #tpu.memory_space<vmem>>, vector<8x128xf32>,
    %c0_i32_14 = arith.constant 0 : i32
    %18 = arith.cmpi eq, %arg1, %c0_i32_14 : i32
    %19 = arith.extui %18 : i1 to i32
    %c0_i32_15 = arith.constant 0 : i32
    %20 = arith.cmpi ne, %19, %c0_i32_15 : i32
    scf.if %20 {
      %c0_16 = arith.constant 0 : index
      %c0_17 = arith.constant 0 : index
      %21 = vector.load %arg8[%c0_16, %c0_17] : memref<8x128xf32, #tpu.memory_space<vmem>>, vector<8x128xf32>
      %c0_18 = arith.constant 0 : index
      %c0_19 = arith.constant 0 : index
      %22 = vector.load %arg6[%c0_18, %c0_19] : memref<1x128xf32, #tpu.memory_space<vmem>>, vector<1x128xf32>
      %23 = vector.broadcast %22 : vector<1x128xf32> to vector<8x128xf32>
      %24 = arith.addf %21, %23 : vector<8x128xf32>
      %c0_20 = arith.constant 0 : index
      %c0_21 = arith.constant 0 : index
      %25 = vector.load %arg7[%c0_20, %c0_21] : memref<8x128xf32, #tpu.memory_space<vmem>>, vector<8x128xf32>
      tpu.vector_store %arg7[%c0_20, %c0_21], %24 {strides = array<i32>} : memref<8x128xf32, #tpu.memory_space<vmem>>, vector<8x128xf32>,
    } else {
    }
    return
  }
  func.func @transform_0(%arg0: i32, %arg1: i32) -> (i32, i32) {
    %c0_i32 = arith.constant 0 : i32
    %c0_i32_0 = arith.constant 0 : i32
    return %arg0, %c0_i32 : i32, i32
  }
  func.func @transform_1(%arg0: i32, %arg1: i32) -> (i32, i32) {
    %c0_i32 = arith.constant 0 : i32
    %c0_i32_0 = arith.constant 0 : i32
    return %c0_i32, %arg1 : i32, i32
  }
  func.func @transform_2(%arg0: i32, %arg1: i32) -> (i32, i32) {
    %c0_i32 = arith.constant 0 : i32
    %c0_i32_0 = arith.constant 0 : i32
    return %c0_i32, %arg1 : i32, i32
  }
  func.func @transform_3(%arg0: i32, %arg1: i32) -> (i32, i32) {
    %c0_i32 = arith.constant 0 : i32
    %c0_i32_0 = arith.constant 0 : i32
    return %arg1, %c0_i32 : i32, i32
  }
  func.func @transform_4(%arg0: i32, %arg1: i32) -> (i32, i32) {
    %c0_i32 = arith.constant 0 : i32
    %c0_i32_0 = arith.constant 0 : i32
    %c0_i32_1 = arith.constant 0 : i32
    return %c0_i32, %c0_i32_0 : i32, i32
  }
  func.func @transform_5(%arg0: i32, %arg1: i32) -> (i32, i32) {
    %c0_i32 = arith.constant 0 : i32
    %c0_i32_0 = arith.constant 0 : i32
    return %arg0, %c0_i32 : i32, i32
  }
}

</mosaic_0001>

<bundles_post_ra>
// kernel: positionwise_ffn_prepared.1
= control target key start
LH: loop header
LB: loop body
LE: loop exit
PB: predicated region body
PF: predicated region fallthrough
CT: control target
= control target key end

     0   :  { %10 = vsyncpa [#allocation4], 0  ;;  %s1396_s0 = inlined_call_operand.hbm [shape: f32[16,128], index: 0, kind: input, shape index: {}]   ;;  %s1397_s1 = inlined_call_operand.hbm [shape: bf16[128,256], index: 1, kind: input, shape index: {}]   ;;  %s1398_s2 = inlined_call_operand.vmem [shape: f32[1,256], index: 2, kind: input, shape index: {}]   ;;  %s1399_s3 = inlined_call_operand.hbm [shape: bf16[256,128], index: 3, kind: input, shape index: {}]   ;;  %s1400_s4 = inlined_call_operand.vmem [shape: f32[1,128], index: 4, kind: input, shape index: {}]   ;;  %s1401_s5 = inlined_call_operand.hbm [shape: f32[16,128], index: 5, kind: output, shape index: {}]  }
   0x1   :  { %12 = vsyncpa [#allocation4 + $0x1], 0 }
   0x2   :  { %13 = vsyncpa [#allocation7], 0 }
   0x3   :  { %14 = vsyncpa [#allocation5], 0 }
   0x4   :  { %16 = vsyncpa [#allocation5 + $0x1], 0  ;;  %s1239_s18 = smov 0   ;;  %s1241_s19 = smov 0  }
   0x5   :  { %s1243_s20 = smov 0   ;;  %s1245_s21 = smov 0  }
   0x6   :  { %s1247_s22 = smov 0   ;;  %s1249_s23 = smov 0  }
   0x7 LB: > { %s759_s24 = sadd.s32 4294967295, %s1201_s23   ;;  %p761_p0 = scmp.ge.s32.totalorder %s1201_s23, 1  ;;  %s1201_s23 = sphi %s1249_s23, %s22_s23   ;;  %s1197_s22 = sphi %s1247_s22, %s1411_s22   ;;  %s1193_s21 = sphi %s1245_s21, %s1410_s21   ;;  %s1189_s20 = sphi %s1243_s20, %s1409_s20   ;;  %s1185_s19 = sphi %s1241_s19, %s1408_s19   ;;  %s1181_s18 = sphi %s1239_s18, %s1407_s18  }
   0x8   : > { %p1273_p1 = scmp.eq.s32.totalorder %s759_s24, 0  ;;  %p190_p2 = scmp.lt.s32.totalorder %s1201_s23, 3 }
   0x9   : > { %s204_s28 = sshll.u32 %s1397_s1, 4  ;;  %s1203_s30 = smov [#allocation6]   ;;  %s205_s28 = int_to_ptr.hbm [resolvable:$true] %s204_s28 }
   0xa   : > { %p1281_p3 = pnand %p761_p0, %p190_p2  ;;  %s206_s6 = sshll.u32 %s1203_s30, 4  ;;  %s207_s6 = int_to_ptr.vmem [resolvable:$true] %s206_s6 }
   0xb   : > { %p765_p6 = scmp.ge.s32.totalorder %s1201_s23, 2  ;;  %s229_s9 = sshll.u32 %s1399_s3, 4  ;;  %s230_s9 = int_to_ptr.hbm [resolvable:$true] %s229_s9 }
   0xc   : > { %p949_p4 = pneg %p1281_p3  ;;  %s1204_s10 = smov 128  }
   0xd   : > { %s1205_s11 = smov 8   ;;  %s1206_s12 = smov [#allocation8]  }
   0xe   : > { %p950_p5 = pnand %p949_p4, %p1273_p1  ;;  %s231_s13 = sshll.u32 %s1206_s12, 4  ;;  %s232_s13 = int_to_ptr.vmem [resolvable:$true] %s231_s13 }
   0xf   : > { %s1207_s14 = smov 64   ;;  %s1208_s15 = smov 4  }
  0x10   : > { %952 = dma.hbm_to_vmem [thread:$0]  (!%p950_p5), %s205_s28, 2048, %s207_s6, [#allocation7], %s1204_s10, %s1204_s10, %s1205_s11  }
  0x11   : > { %955 = dma.hbm_to_vmem [thread:$0]  (!%p950_p5), %s230_s9, 2048, %s232_s13, [#allocation7], %s1207_s14, %s1207_s14, %s1208_s15  }
  0x12   : > { %s34_s16 = sadd.s32 1, %s1197_s22  ;;  %s760_s17 = sadd.s32 4294967294, %s1201_s23  }
  0x13   : > { %p36_p7 = scmp.ge.s32.totalorder %s34_s16, 2  ;;  %s41_s26 = sadd.s32 1, %s1189_s20 }
  0x14   : > { %p48_p8 = scmp.ne.s32.totalorder %s1189_s20, %s1185_s19  ;;  %p49_p9 = scmp.eq.s32.totalorder %s1201_s23, 0 }
  0x15   : > { %s1413_s16 = smov (%p36_p7, %s34_s16), 0  ;;  %p54_p10 = scmp.ne.s32.totalorder %s1185_s19, %s1181_s18 }
  0x16   : > { %s38_s27 = ssub.s32 %s1197_s22, %s1413_s16  ;;  %p177_p11 = scmp.eq.s32.totalorder %s759_s24, 1 }
  0x17   : > { %p39_p12 = scmp.eq.s32.totalorder %s38_s27, 0  ;;  %p1309_p13 = por %p1273_p1, %p54_p10 }
  0x18   : > { %p1313_p0 = por %p177_p11, %p48_p8  ;;  %p183_p2 = scmp.eq.s32.totalorder %s760_s17, 1 }
  0x19   : > { %s1318_s6 = scalar_select %p39_p12, %s1189_s20, %s41_s26  }
  0x1a   : > { %p50_p4 = por %p49_p9, %p48_p8  ;;  %p1320_p5 = por %p183_p2, %p54_p10 }
  0x1b   : > { %s248_s8 = sand.u32 1, %s1189_s20   ;;  %s767_s24 = sshll.u32 %s1197_s22, 3 }
  0x1c   : > { %p966_p7 = scmp.lt.s32.totalorder %s1201_s23, 2  ;;  %s766_s9 = sshll.u32 %s248_s8, 3 }
  0x1d   : > { %s256_s12 = scalar_lea.hbm %s1396_s0, %s767_s24  ;;  %s252_s14 = scalar_lea.vmem [#allocation3], %s766_s9 }
  0x1e   : > { %s258_s13 = sshll.u32 %s256_s12, 4  ;;  %s260_s15 = sshll.u32 %s252_s14, 4  ;;  %s259_s13 = int_to_ptr.hbm [resolvable:$true] %s258_s13  ;;  %s261_s15 = int_to_ptr.vmem [resolvable:$true] %s260_s15 }
  0x1f   : > { %p957_p11 = pnand %p966_p7, %p50_p4  ;;  %s249_s17 = scalar_lea.sflag [#allocation4], %s248_s8 }
  0x20   : > { %269 = sbr.rel (%p1281_p3) target bundleno = 347 (0x15b), region = 40  ;;  %s1333_s26 = sand.u32 (!%p1281_p3), 1, %s1185_s19  }
  0x21   : > { %959 = dma.hbm_to_vmem [thread:$0]  (!%p957_p11), %s259_s13, 128, %s261_s15, %s249_s17  }
  0x22   : > { %s769_s27 = sshll.u32 (!%p1281_p3), %s1333_s26, 3  ;;  %s272_s24 = scalar_lea.sflag (!%p1281_p3), [#allocation4], %s1333_s26 }
  0x23   : > { %s1339_s9 = scalar_lea.vmem (!%p1281_p3), [#allocation3], %s769_s27 }
  0x25   : > { %1168 = dma.done.wait (%p1309_p13), %s272_s24, 128  }
  0x26   : > { %1170 = vsyncadd (%p1309_p13), %s272_s24, 4294967168 }
  0x27   : > { %1172 = dma.done.wait (%p1273_p1), [#allocation7], 4096  }
  0x28   : > { %1174 = vsyncadd (%p1273_p1), [#allocation7], 4294963200  ;;  %v831_v0 = vld [vmem:[#allocation6 + $0x70] sm:$0xf]  ;;  %v920_v1 = vld [vmem:[#allocation6 + $0x74] sm:$0xf0] }
  0x29   : > { %v919_v2 = vld [vmem:[#allocation6 + $0x74] sm:$0xf]  ;;  %v832_v3 = vor.u32 %v920_v1, %v831_v0  ;;  %v833_v4 = vld [vmem:[#allocation6 + $0x78] sm:$0xf0]  ;;  %v823_v5 = vld [vmem:[#allocation6 + $0x60] sm:$0xf] }
  0x2a   : > { %v918_v6 = vld [vmem:[#allocation6 + $0x64] sm:$0xf0]  ;;  %v836_v7 = vor.u32 %v919_v2, %v833_v4  ;;  %v917_v8 = vld [vmem:[#allocation6 + $0x64] sm:$0xf]  ;;  %v825_v9 = vld [vmem:[#allocation6 + $0x68] sm:$0xf0] }
  0x2b   : > { %433 = vmatpush.bf16.msra.mxu0 %v832_v3  ;;  %v824_v10 = vor.u32 %v918_v6, %v823_v5  ;;  %v828_v11 = vor.u32 %v917_v8, %v825_v9  ;;  %v815_v12 = vld [vmem:[#allocation6 + $0x50] sm:$0xf]  ;;  %v916_v13 = vld [vmem:[#allocation6 + $0x54] sm:$0xf0]  ;;  %v915_v14 = vld [vmem:[#allocation6 + $0x54] sm:$0xf] }
  0x2c   : > { %446 = vmatpush.bf16.msra.mxu1 %v836_v7  ;;  %v817_v15 = vld [vmem:[#allocation6 + $0x58] sm:$0xf0]  ;;  %v816_v16 = vor.u32 %v916_v13, %v815_v12  ;;  %v807_v18 = vld [vmem:[#allocation6 + $0x40] sm:$0xf]  ;;  %v914_v19 = vld [vmem:[#allocation6 + $0x44] sm:$0xf0] }
  0x2d   : > { %v820_v17 = vor.u32 %v915_v14, %v817_v15  ;;  %v913_v20 = vld [vmem:[#allocation6 + $0x44] sm:$0xf]  ;;  %v809_v21 = vld [vmem:[#allocation6 + $0x48] sm:$0xf0]  ;;  %v808_v22 = vor.u32 %v914_v19, %v807_v18  ;;  %v928_v23 = vld [vmem:[#allocation8 + $0x38] sm:$0xff]  ;;  %s902_s28 = sshll.u32 %s1193_s21, 3 }
  0x2e   : > { %v936_v24 = vld [vmem:[#allocation8 + $0x78] sm:$0xff]  ;;  %v812_v25 = vor.u32 %v913_v20, %v809_v21  ;;  %v799_v26 = vld [vmem:[#allocation6 + $0x30] sm:$0xf]  ;;  %v911_v28 = vld [vmem:[#allocation6 + $0x34] sm:$0xf]  ;;  %592 = vmatpush.bf16.msra.mxu2 %v928_v23  ;;  %s641_s11 = scalar_lea.hbm %s1401_s5, %s902_s28  ;;  %s316_s14 = scalar_lea.vmem [#allocation9], %s769_s27 }
  0x2f   : > { %434 = vmatpush.bf16.msra.mxu0 %v824_v10  ;;  %v912_v27 = vld [vmem:[#allocation6 + $0x34] sm:$0xf0]  ;;  %v801_v29 = vld [vmem:[#allocation6 + $0x38] sm:$0xf0]  ;;  %605 = vmatpush.bf16.msra.mxu3 %v936_v24  ;;  %v927_v30 = vld [vmem:[#allocation8 + $0x30] sm:$0xff]  ;;  %s643_s15 = sshll.u32 %s316_s14, 4  ;;  %s644_s15 = int_to_ptr.vmem [resolvable:$true] %s643_s15 }
  0x30   : > { %447 = vmatpush.bf16.msra.mxu1 %v828_v11  ;;  %v935_v31 = vld [vmem:[#allocation8 + $0x70] sm:$0xff]  ;;  %v800_v32 = vor.u32 %v912_v27, %v799_v26  ;;  %v804_v33 = vor.u32 %v911_v28, %v801_v29  ;;  %v791_v34 = vld [vmem:[#allocation6 + $0x20] sm:$0xf]  ;;  %v910_v35 = vld [vmem:[#allocation6 + $0x24] sm:$0xf0]  ;;  %s645_s17 = sshll.u32 %s641_s11, 4  ;;  %s646_s17 = int_to_ptr.hbm [resolvable:$true] %s645_s17 }
  0x31   : > { %v909_v36 = vld [vmem:[#allocation6 + $0x24] sm:$0xf]  ;;  %v793_v37 = vld [vmem:[#allocation6 + $0x28] sm:$0xf0]  ;;  %v792_v40 = vor.u32 %v910_v35, %v791_v34  ;;  %v783_v42 = vld [vmem:[#allocation6 + $0x10] sm:$0xf] }
  0x32   : > { %593 = vmatpush.bf16.msra.mxu2 %v927_v30  ;;  %v926_v38 = vld [vmem:[#allocation8 + $0x28] sm:$0xff]  ;;  %v796_v41 = vor.u32 %v909_v36, %v793_v37  ;;  %v908_v43 = vld [vmem:[#allocation6 + $0x14] sm:$0xf0]  ;;  %v907_v44 = vld [vmem:[#allocation6 + $0x14] sm:$0xf]  ;;  %s631_s21 = scalar_lea.sflag [#allocation5], %s1333_s26 }
  0x33   : > { %435 = vmatpush.bf16.msra.mxu0 %v816_v16  ;;  %606 = vmatpush.bf16.msra.mxu3 %v935_v31  ;;  %v934_v39 = vld [vmem:[#allocation8 + $0x68] sm:$0xff]  ;;  %v785_v45 = vld [vmem:[#allocation6 + $0x18] sm:$0xf0]  ;;  %v925_v46 = vld [vmem:[#allocation8 + $0x20] sm:$0xff]  ;;  %v784_v48 = vor.u32 %v908_v43, %v783_v42  ;;  %s1129_s24 = sshra.s32 %s646_s17, 4  ;;  %s1135_s28 = scalar_lea.hbm %s1401_s5, 16  ;;  %s1130_s24 = int_to_ptr.hbm [resolvable:$true] %s1129_s24 }
  0x34   : > { %448 = vmatpush.bf16.msra.mxu1 %v820_v17  ;;  %v933_v47 = vld [vmem:[#allocation8 + $0x60] sm:$0xff]  ;;  %v788_v49 = vor.u32 %v907_v44, %v785_v45  ;;  %v906_v51 = vld [vmem:[#allocation6 + $0x4] sm:$0xf0]  ;;  %v777_v53 = vld [vmem:[#allocation6 + $0x8] sm:$0xf0]  ;;  %p1136_p9 = scmp.lt.s32.totalorder %s1130_s24, %s1401_s5 }
  0x35   : > { %v775_v50 = vld [vmem:[#allocation6] sm:$0xf]  ;;  %v905_v52 = vld [vmem:[#allocation6 + $0x4] sm:$0xf]  ;;  %v924_v54 = vld [vmem:[#allocation8 + $0x18] sm:$0xff] }
  0x36   : > { %594 = vmatpush.bf16.msra.mxu2 %v926_v38  ;;  %v932_v55 = vld [vmem:[#allocation8 + $0x58] sm:$0xff]  ;;  %v776_v56 = vor.u32 %v906_v51, %v775_v50  ;;  %v780_v58 = vor.u32 %v905_v52, %v777_v53  ;;  %v923_v59 = vld [vmem:[#allocation8 + $0x10] sm:$0xff]  ;;  %v922_v62 = vld [vmem:[#allocation8 + $0x8] sm:$0xff] }
  0x37   : > { %436 = vmatpush.bf16.msra.mxu0 %v808_v22  ;;  %607 = vmatpush.bf16.msra.mxu3 %v934_v39  ;;  %v329_v57 = vld [vmem:[%s1339_s9] sm:$0xff]  ;;  %v930_v63 = vld [vmem:[#allocation8 + $0x48] sm:$0xff]  ;;  %v921_v0 = vld [vmem:[#allocation8] sm:$0xff]  ;;  %s1131_s9 = scalar_lea.hbm %s1130_s24, 8 }
  0x38   : > { %449 = vmatpush.bf16.msra.mxu1 %v812_v25  ;;  %v931_v60 = vld [vmem:[#allocation8 + $0x50] sm:$0xff]  ;;  %v330_v61 = vpack.c.bf16 %v329_v57, %v329_v57  ;;  %v929_v1 = vld [vmem:[#allocation8 + $0x40] sm:$0xff]  ;;  %p1132_p1 = scmp.ne.s32.totalorder %s1130_s24, %s1131_s9  ;;  %p1137_p10 = scmp.lt.s32.totalorder %s1135_s28, %s1131_s9 }
  0x39   : > { %v347_v2 = vld [vmem:[%s1398_s2] sm:$0x3] }
  0x3a   : > { %595 = vmatpush.bf16.msra.mxu2 %v925_v46  ;;  %v349_v3 = vperm.slane %v347_v2, 0  ;;  %v350_v4 = vperm.slane %v347_v2, 1  ;;  %v1024_v16 = vld [vmem:[%s1400_s4] ss:$0 sm:$0xff]  ;;  %p1133_p3 = pnand %p1132_p1, %p1313_p0  ;;  %p1138_p12 = por %p1137_p10, %p1136_p9 }
  0x3b   : > { %437 = vmatpush.bf16.msra.mxu0 %v800_v32  ;;  %608 = vmatpush.bf16.msra.mxu3 %v933_v47 }
  0x3c   : > { %450 = vmatpush.bf16.msra.mxu1 %v804_v33  ;;  %p1134_p8 = pneg %p1133_p3 }
  0x3e   : > { %596 = vmatpush.bf16.msra.mxu2 %v924_v54  ;;  %p1139_p13 = pnand %p1138_p12, %p1134_p8 }
  0x3f   : > { %438 = vmatpush.bf16.msra.mxu0 %v792_v40  ;;  %609 = vmatpush.bf16.msra.mxu3 %v932_v55 }
  0x40   : > { %451 = vmatpush.bf16.msra.mxu1 %v796_v41 }
  0x42   : > { %597 = vmatpush.bf16.msra.mxu2 %v923_v59 }
  0x43   : > { %439 = vmatpush.bf16.msra.mxu0 %v784_v48  ;;  %610 = vmatpush.bf16.msra.mxu3 %v931_v60 }
  0x44   : > { %452 = vmatpush.bf16.msra.mxu1 %v788_v49 }
  0x46   : > { %598 = vmatpush.bf16.msra.mxu2 %v922_v62 }
  0x47   : > { %440 = vmatpush.bf16.msra.mxu0 %v776_v56  ;;  %611 = vmatpush.bf16.msra.mxu3 %v930_v63 }
  0x48   : > { %453 = vmatpush.bf16.msra.mxu1 %v780_v58 }
  0x4a   : > { %441 = vmatmul.bf16.vlgmr.msra.gmra.mxu0 %v330_v61  ;;  %599 = vmatpush.bf16.msra.mxu2 %v921_v0 }
  0x4b   : > { %454 = vmatmul.bf16.vlgmr.msra.gmra.mxu1 %v330_v61  ;;  %612 = vmatpush.bf16.msra.mxu3 %v929_v1 }
  0xc7   : > { %v442_v5 = vpop.f32.mrf.mxu0 }
  0xc8   : > { %v443_v6 = vadd.f32 %v442_v5, %v349_v3  ;;  %v455_v7 = vpop.f32.mrf.mxu1 }
  0xc9   : > { %v456_v8 = vadd.f32 %v455_v7, %v350_v4 }
  0xca   : > { %v459_v9 = vmax.f32 %v443_v6, 0.0 }
  0xcb   : > { %v460_v10 = vmax.f32 %v456_v8, 0.0 }
  0xcc   : > { %v462_v11 = vpack.c.bf16 %v459_v9, %v459_v9 }
  0xcd   : > { %v463_v12 = vpack.c.bf16 %v460_v10, %v460_v10 }
  0xce   : > { %600 = vmatmul.bf16.vlgmr.msra.gmra.mxu2 %v462_v11 }
  0xcf   : > { %613 = vmatmul.bf16.vlgmr.msra.gmra.mxu3 %v463_v12  ;;  %v444_v13 = vpop.f32.mrf.mxu0 }
  0xd0   : > { %v457_v14 = vpop.f32.mrf.mxu1 }
 0x151   : > { %v601_v15 = vpop.f32.mrf.mxu2 }
 0x152   : > { %v614_v17 = vpop.f32.mrf.mxu3 }
 0x153   : > { %v615_v18 = vadd.f32 %v614_v17, %v601_v15 }
 0x155   : > { %v628_v19 = vadd.f32 %v1024_v16, %v615_v18 }
 0x157   : > { %629 = vst [vmem:[%s316_s14] sm:$0xff] %v628_v19 }
 0x158   : > { %1142 = shalt.err (!%p1139_p13)
}
 0x159   : > { %947 = dma.vmem_to_hbm [thread:$0]  (%p1313_p0), %s644_s15, 128, %s646_s17, %s631_s21   ;;  %v603_v20 = vpop.f32.mrf.mxu2 }
 0x15a   : > { %v616_v21 = vpop.f32.mrf.mxu3 }
 0x15b PF: > { %s657_s26 = sand.u32 1, %s1181_s18   ;;  %p961_p2 = pnand %p765_p6, %p1320_p5 }
 0x15c   : > { %s658_s10 = scalar_lea.sflag [#allocation5], %s657_s26 }
 0x15d   : > { %p962_p4 = pneg %p961_p2 }
 0x15f   : > { %1176 = dma.done.wait (%p962_p4), %s658_s10, 128  }
 0x160   : > { %1178 = vsyncadd (%p962_p4), %s658_s10, 4294967168  ;;  %s22_s23 = sadd.s32 1, %s1201_s23   ;;  %s1407_s18 = smov %s1185_s19 }
 0x161   : > { %p19_p7 = scmp.ge.s32.totalorder %s22_s23, 4   ;;  %s1408_s19 = smov %s1189_s20 }
 0x162   : > { %s1409_s20 = smov %s1318_s6  ;;  %s1410_s21 = smov %s1197_s22 }
 0x163   : > { %s1411_s22 = smov %s1413_s16  ;;  %21 = sbr.rel (!%p19_p7) target bundleno = 7 (0x7), region = 106 }
 0x168   :  { %664 = vsyncpa [#allocation4], 1 }
 0x169   :  { %666 = vsyncpa [#allocation4 + $0x1], 1 }
 0x16a   :  { %667 = vsyncpa [#allocation7], 1 }
 0x16b   :  { %668 = vsyncpa [#allocation5], 1 }
 0x16c   :  { %670 = vsyncpa [#allocation5 + $0x1], 1 }

</bundles_post_ra>
